<compile_context>
chip_gen: v6e
topology: v6e:2x2x1
jax: 0.10.0
libtpu: 0.0.40
codegen_flags: <defaults>
</compile_context>

<pallas_src>
import functools

import jax
import jax.numpy as jnp
from jax.experimental import pallas as pl
from jax.experimental.pallas import tpu as pltpu


def _latent_sampling_kernel(
    x_ref, eps_ref,
    wm_ref, bm_ref,      # sampling head (mean):    d_in    -> d_out
    wv_ref, bv_ref,      # sampling head (log_var): d_in    -> d_out
    w1_ref, b1_ref,      # ResidualMLP.fc1:         d_out   -> 2*d_out
    w2_ref, b2_ref,      # ResidualMLP.fc2:         2*d_out -> 2*d_out
    w3_ref, b3_ref,      # ResidualMLP.fc3:         2*d_out -> d_out
    out_ref,             # [tm, 4*d_out] = [mean | log_var | Zt | Yt]
):
    cdt = wm_ref.dtype   # matmul operand dtype (bf16); accumulation stays f32.

    x = x_ref[...].astype(cdt)

    # Sampling linear, pre-split into two lane-aligned heads (no mid-vreg lane slice).
    mean = jnp.dot(x, wm_ref[...], preferred_element_type=jnp.float32) + bm_ref[...]
    log_var = jnp.dot(x, wv_ref[...], preferred_element_type=jnp.float32) + bv_ref[...]

    # Reparameterization in f32 (VPU/EUP): std = exp(0.5*log_var); Zt = mean + eps*std.
    std = jnp.exp(0.5 * log_var)
    zt = mean + eps_ref[...] * std

    # ResidualMLP: bf16 operands on the MXU, f32 accumulate, f32 elementwise.
    h1 = jnp.maximum(
        jnp.dot(zt.astype(cdt), w1_ref[...], preferred_element_type=jnp.float32)
        + b1_ref[...], 0.0)
    h2 = jnp.maximum(
        jnp.dot(h1.astype(cdt), w2_ref[...], preferred_element_type=jnp.float32)
        + b2_ref[...], 0.0)
    residual = (jnp.dot(h2.astype(cdt), w3_ref[...], preferred_element_type=jnp.float32)
                + b3_ref[...])
    yt = zt + residual

    # Single lane-dense store per tile (one writeback slab instead of four narrow ones).
    out_ref[...] = jnp.concatenate([mean, log_var, zt, yt], axis=-1)


def _round_up(n, m):
    return ((n + m - 1) // m) * m


@functools.partial(jax.jit, static_argnames=("tm", "param_dtype"))
def latent_sampling(x, eps, params, *, tm=512, param_dtype=jnp.bfloat16):
    """x: [bs, nframes, input_dim] f32; eps: [bs, nframes, output_dim] f32 N(0,1) noise."""
    bs, nframes, d_in = x.shape
    d_out = params["w3"].shape[-1]
    hid = 2 * d_out
    M = bs * nframes

    # Adaptive row tile (multiple of 8); pad M instead of requiring divisibility.
    tm_req = _round_up(max(tm, 8), 8)
    tm_eff = min(tm_req, _round_up(M, 8))
    M_pad = _round_up(M, tm_eff)

    x2 = x.reshape(M, d_in).astype(jnp.float32)
    eps2 = eps.reshape(M, d_out).astype(jnp.float32)
    if M_pad != M:
        pad = M_pad - M
        x2 = jnp.pad(x2, ((0, pad), (0, 0)))
        eps2 = jnp.pad(eps2, ((0, pad), (0, 0)))

    # Pre-split sampling weights/bias into lane-aligned mean / log_var heads.
    wdt = param_dtype
    ws = params["ws"]
    bsmp = params["bs"].astype(jnp.float32)
    wm, wv = ws[:, :d_out].astype(wdt), ws[:, d_out:].astype(wdt)
    bm, bv = bsmp[:, :d_out], bsmp[:, d_out:]
    w1, b1 = params["w1"].astype(wdt), params["b1"].astype(jnp.float32)
    w2, b2 = params["w2"].astype(wdt), params["b2"].astype(jnp.float32)
    w3, b3 = params["w3"].astype(wdt), params["b3"].astype(jnp.float32)

    full = lambda arr: pl.BlockSpec(arr.shape, lambda i: (0,) * arr.ndim)
    row = lambda cols: pl.BlockSpec((tm_eff, cols), lambda i: (i, 0))

    # Advisory cost estimate for the XLA scheduler.
    flops = 2 * M_pad * (2 * d_in * d_out + d_out * hid + hid * hid + hid * d_out)
    w_item = jnp.dtype(wdt).itemsize
    weight_bytes = w_item * (2 * d_in * d_out + d_out * hid + hid * hid + hid * d_out)
    bias_bytes = 4 * (2 * d_out + hid + hid + d_out)
    bytes_accessed = (4 * M_pad * d_in          # x
                      + 4 * M_pad * d_out       # eps
                      + 4 * M_pad * 4 * d_out   # concatenated output
                      + weight_bytes + bias_bytes)
    cost = pl.CostEstimate(flops=flops,
                           transcendentals=M_pad * d_out,
                           bytes_accessed=bytes_accessed)

    out = pl.pallas_call(
        _latent_sampling_kernel,
        out_shape=jax.ShapeDtypeStruct((M_pad, 4 * d_out), jnp.float32),
        grid_spec=pltpu.PrefetchScalarGridSpec(
            num_scalar_prefetch=0,
            grid=(M_pad // tm_eff,),
            in_specs=[
                row(d_in),              # x tile
                row(d_out),             # eps tile
                full(wm), full(bm),
                full(wv), full(bv),
                full(w1), full(b1),
                full(w2), full(b2),
                full(w3), full(b3),
            ],
            out_specs=row(4 * d_out),
        ),
        compiler_params=pltpu.CompilerParams(
            dimension_semantics=("parallel",),
            vmem_limit_bytes=48 * 1024 * 1024,
        ),
        cost_estimate=cost,
    )(x2, eps2, wm, bm, wv, bv, w1, b1, w2, b2, w3, b3)

    out = out[:M]
    mean = out[:, 0 * d_out:1 * d_out]
    log_var = out[:, 1 * d_out:2 * d_out]
    zt = out[:, 2 * d_out:3 * d_out]
    yt = out[:, 3 * d_out:4 * d_out]
    rs = lambda a: a.reshape(bs, nframes, d_out)
    return rs(mean), rs(log_var), rs(zt), rs(yt)


def init_params(key, input_dim, output_dim):
    """Deterministic synthetic parameters (shapes match the PyTorch module's __init__)."""
    hid = output_dim * 2
    keys = jax.random.split(key, 8)

    def lin(kw, kb, fan_in, fan_out):
        bound = 1.0 / jnp.sqrt(fan_in)
        w = jax.random.uniform(kw, (fan_in, fan_out), jnp.float32, -bound, bound)
        b = jax.random.uniform(kb, (1, fan_out), jnp.float32, -bound, bound)
        return w, b

    ws, bsamp = lin(keys[0], keys[1], input_dim, 2 * output_dim)   # sampling
    w1, b1 = lin(keys[2], keys[3], output_dim, hid)                # fc1
    w2, b2 = lin(keys[4], keys[5], hid, hid)                       # fc2
    w3, b3 = lin(keys[6], keys[7], hid, output_dim)                # fc3
    return dict(ws=ws, bs=bsamp, w1=w1, b1=b1, w2=w2, b2=b2, w3=w3, b3=b3)


def latent_sampling_ref(x, eps, p, param_dtype=jnp.float32):
    """Pure-JAX reference mirroring the PyTorch forward.

    With param_dtype=jnp.bfloat16 it mirrors the kernel's mixed-precision policy
    (bf16 matmul operands, f32 accumulation, f32 elementwise)."""
    d_out = p["w3"].shape[-1]
    cast = lambda a: a.astype(param_dtype)
    dot = lambda a, w: jnp.dot(cast(a), cast(w), preferred_element_type=jnp.float32)

    mean = dot(x, p["ws"][:, :d_out]) + p["bs"][0, :d_out]
    log_var = dot(x, p["ws"][:, d_out:]) + p["bs"][0, d_out:]
    std = jnp.exp(0.5 * log_var)
    zt = mean + eps * std
    h1 = jax.nn.relu(dot(zt, p["w1"]) + p["b1"][0])
    h2 = jax.nn.relu(dot(h1, p["w2"]) + p["b2"][0])
    yt = zt + dot(h2, p["w3"]) + p["b3"][0]
    return mean, log_var, zt, yt


if __name__ == "__main__":
    key = jax.random.PRNGKey(0)
    k_x, k_eps, k_p = jax.random.split(key, 3)

    bs, nframes = 2, 8
    input_dim, output_dim = 32, 16

    x = jax.random.normal(k_x, (bs, nframes, input_dim), jnp.float32)
    # rsample noise supplied explicitly so the kernel is deterministic.
    eps = jax.random.normal(k_eps, (bs, nframes, output_dim), jnp.float32)
    params = init_params(k_p, input_dim, output_dim)

    outs = jax.block_until_ready(latent_sampling(x, eps, params))

    # Tight check against a reference that mirrors the kernel's bf16/f32 precision policy,
    # and a looser check against the pure-f32 reference (PyTorch forward semantics).
    refs_mixed = latent_sampling_ref(x, eps, params, param_dtype=jnp.bfloat16)
    refs_f32 = latent_sampling_ref(x, eps, params, param_dtype=jnp.float32)
    for o, rm, rf in zip(outs, refs_mixed, refs_f32):
        assert o.shape == rm.shape and o.dtype == jnp.float32
        assert float(jnp.max(jnp.abs(o - rm))) < 5e-3
        assert float(jnp.max(jnp.abs(o - rf))) < 8e-2

    # Ragged case: bs*nframes not a multiple of 8 -> exercises the padded-M path.
    x_odd = jax.random.normal(k_x, (2, 7, input_dim), jnp.float32)
    eps_odd = jax.random.normal(k_eps, (2, 7, output_dim), jnp.float32)
    outs_odd = jax.block_until_ready(latent_sampling(x_odd, eps_odd, params))
    refs_odd = latent_sampling_ref(x_odd, eps_odd, params, param_dtype=jnp.bfloat16)
    for o, r in zip(outs_odd, refs_odd):
        assert o.shape == r.shape
        assert float(jnp.max(jnp.abs(o - r))) < 5e-3

    print("KERNEL_OK")
</pallas_src>

<mosaic_0001>
module attributes {stable_mosaic.version = 11 : i64} {
  func.func @_latent_sampling_kernel(%arg0: i32, %arg1: memref<16x32xf32, #tpu.memory_space<vmem>>, %arg2: memref<16x16xf32, #tpu.memory_space<vmem>>, %arg3: memref<32x16xbf16, #tpu.memory_space<vmem>>, %arg4: memref<1x16xf32, #tpu.memory_space<vmem>>, %arg5: memref<32x16xbf16, #tpu.memory_space<vmem>>, %arg6: memref<1x16xf32, #tpu.memory_space<vmem>>, %arg7: memref<16x32xbf16, #tpu.memory_space<vmem>>, %arg8: memref<1x32xf32, #tpu.memory_space<vmem>>, %arg9: memref<32x32xbf16, #tpu.memory_space<vmem>>, %arg10: memref<1x32xf32, #tpu.memory_space<vmem>>, %arg11: memref<32x16xbf16, #tpu.memory_space<vmem>>, %arg12: memref<1x16xf32, #tpu.memory_space<vmem>>, %arg13: memref<16x64xf32, #tpu.memory_space<vmem>>) attributes {dimension_semantics = [#tpu.dimension_semantics<parallel>], iteration_bounds = array<i64: 1>, scalar_prefetch = 0 : i64, scratch_operands = 0 : i64, tpu.core_type = #tpu.core_type<tc>, window_params = [{transform_indices = @transform_0, window_bounds = array<i64: 16, 32>}, {transform_indices = @transform_1, window_bounds = array<i64: 16, 16>}, {pipeline_mode = #tpu.pipeline_mode<synchronous>, transform_indices = @transform_2, window_bounds = array<i64: 32, 16>}, {pipeline_mode = #tpu.pipeline_mode<synchronous>, transform_indices = @transform_3, window_bounds = array<i64: 1, 16>}, {pipeline_mode = #tpu.pipeline_mode<synchronous>, transform_indices = @transform_4, window_bounds = array<i64: 32, 16>}, {pipeline_mode = #tpu.pipeline_mode<synchronous>, transform_indices = @transform_5, window_bounds = array<i64: 1, 16>}, {pipeline_mode = #tpu.pipeline_mode<synchronous>, transform_indices = @transform_6, window_bounds = array<i64: 16, 32>}, {pipeline_mode = #tpu.pipeline_mode<synchronous>, transform_indices = @transform_7, window_bounds = array<i64: 1, 32>}, {pipeline_mode = #tpu.pipeline_mode<synchronous>, transform_indices = @transform_8, window_bounds = array<i64: 32, 32>}, {pipeline_mode = #tpu.pipeline_mode<synchronous>, transform_indices = @transform_9, window_bounds = array<i64: 1, 32>}, {pipeline_mode = #tpu.pipeline_mode<synchronous>, transform_indices = @transform_10, window_bounds = array<i64: 32, 16>}, {pipeline_mode = #tpu.pipeline_mode<synchronous>, transform_indices = @transform_11, window_bounds = array<i64: 1, 16>}, {transform_indices = @transform_12, window_bounds = array<i64: 16, 64>}]} {
    %c0 = arith.constant 0 : index
    %c0_0 = arith.constant 0 : index
    %0 = vector.load %arg1[%c0, %c0_0] : memref<16x32xf32, #tpu.memory_space<vmem>>, vector<16x32xf32>
    %1 = arith.truncf %0 : vector<16x32xf32> to vector<16x32xbf16>
    %c0_1 = arith.constant 0 : index
    %c0_2 = arith.constant 0 : index
    %2 = vector.load %arg3[%c0_1, %c0_2] : memref<32x16xbf16, #tpu.memory_space<vmem>>, vector<32x16xbf16>
    %cst = arith.constant dense<0.000000e+00> : vector<16x16xf32>
    %3 = tpu.matmul %1, %2, %cst {dimension_numbers = #tpu.dot_dimension_numbers<[1], [0], [0], [1], [0, 0, 1, 1], [], []>} : vector<16x32xbf16>, vector<32x16xbf16>, vector<16x16xf32> -> vector<16x16xf32>
    %c0_3 = arith.constant 0 : index
    %c0_4 = arith.constant 0 : index
    %4 = vector.load %arg4[%c0_3, %c0_4] : memref<1x16xf32, #tpu.memory_space<vmem>>, vector<1x16xf32>
    %5 = vector.broadcast %4 : vector<1x16xf32> to vector<16x16xf32>
    %6 = arith.addf %3, %5 : vector<16x16xf32>
    %c0_5 = arith.constant 0 : index
    %c0_6 = arith.constant 0 : index
    %7 = vector.load %arg5[%c0_5, %c0_6] : memref<32x16xbf16, #tpu.memory_space<vmem>>, vector<32x16xbf16>
    %cst_7 = arith.constant dense<0.000000e+00> : vector<16x16xf32>
    %8 = tpu.matmul %1, %7, %cst_7 {dimension_numbers = #tpu.dot_dimension_numbers<[1], [0], [0], [1], [0, 0, 1, 1], [], []>} : vector<16x32xbf16>, vector<32x16xbf16>, vector<16x16xf32> -> vector<16x16xf32>
    %c0_8 = arith.constant 0 : index
    %c0_9 = arith.constant 0 : index
    %9 = vector.load %arg6[%c0_8, %c0_9] : memref<1x16xf32, #tpu.memory_space<vmem>>, vector<1x16xf32>
    %10 = vector.broadcast %9 : vector<1x16xf32> to vector<16x16xf32>
    %11 = arith.addf %8, %10 : vector<16x16xf32>
    %cst_10 = arith.constant 5.000000e-01 : f32
    %12 = vector.broadcast %cst_10 : f32 to vector<16x16xf32>
    %13 = arith.mulf %12, %11 : vector<16x16xf32>
    %14 = math.exp %13 : vector<16x16xf32>
    %c0_11 = arith.constant 0 : index
    %c0_12 = arith.constant 0 : index
    %15 = vector.load %arg2[%c0_11, %c0_12] : memref<16x16xf32, #tpu.memory_space<vmem>>, vector<16x16xf32>
    %16 = arith.mulf %15, %14 : vector<16x16xf32>
    %17 = arith.addf %6, %16 : vector<16x16xf32>
    %18 = arith.truncf %17 : vector<16x16xf32> to vector<16x16xbf16>
    %c0_13 = arith.constant 0 : index
    %c0_14 = arith.constant 0 : index
    %19 = vector.load %arg7[%c0_13, %c0_14] : memref<16x32xbf16, #tpu.memory_space<vmem>>, vector<16x32xbf16>
    %cst_15 = arith.constant dense<0.000000e+00> : vector<16x32xf32>
    %20 = tpu.matmul %18, %19, %cst_15 {dimension_numbers = #tpu.dot_dimension_numbers<[1], [0], [0], [1], [0, 0, 1, 1], [], []>} : vector<16x16xbf16>, vector<16x32xbf16>, vector<16x32xf32> -> vector<16x32xf32>
    %c0_16 = arith.constant 0 : index
    %c0_17 = arith.constant 0 : index
    %21 = vector.load %arg8[%c0_16, %c0_17] : memref<1x32xf32, #tpu.memory_space<vmem>>, vector<1x32xf32>
    %22 = vector.broadcast %21 : vector<1x32xf32> to vector<16x32xf32>
    %23 = arith.addf %20, %22 : vector<16x32xf32>
    %cst_18 = arith.constant 0.000000e+00 : f32
    %24 = vector.broadcast %cst_18 : f32 to vector<16x32xf32>
    %25 = arith.maximumf %23, %24 : vector<16x32xf32>
    %26 = arith.truncf %25 : vector<16x32xf32> to vector<16x32xbf16>
    %c0_19 = arith.constant 0 : index
    %c0_20 = arith.constant 0 : index
    %27 = vector.load %arg9[%c0_19, %c0_20] : memref<32x32xbf16, #tpu.memory_space<vmem>>, vector<32x32xbf16>
    %cst_21 = arith.constant dense<0.000000e+00> : vector<16x32xf32>
    %28 = tpu.matmul %26, %27, %cst_21 {dimension_numbers = #tpu.dot_dimension_numbers<[1], [0], [0], [1], [0, 0, 1, 1], [], []>} : vector<16x32xbf16>, vector<32x32xbf16>, vector<16x32xf32> -> vector<16x32xf32>
    %c0_22 = arith.constant 0 : index
    %c0_23 = arith.constant 0 : index
    %29 = vector.load %arg10[%c0_22, %c0_23] : memref<1x32xf32, #tpu.memory_space<vmem>>, vector<1x32xf32>
    %30 = vector.broadcast %29 : vector<1x32xf32> to vector<16x32xf32>
    %31 = arith.addf %28, %30 : vector<16x32xf32>
    %cst_24 = arith.constant 0.000000e+00 : f32
    %32 = vector.broadcast %cst_24 : f32 to vector<16x32xf32>
    %33 = arith.maximumf %31, %32 : vector<16x32xf32>
    %34 = arith.truncf %33 : vector<16x32xf32> to vector<16x32xbf16>
    %c0_25 = arith.constant 0 : index
    %c0_26 = arith.constant 0 : index
    %35 = vector.load %arg11[%c0_25, %c0_26] : memref<32x16xbf16, #tpu.memory_space<vmem>>, vector<32x16xbf16>
    %cst_27 = arith.constant dense<0.000000e+00> : vector<16x16xf32>
    %36 = tpu.matmul %34, %35, %cst_27 {dimension_numbers = #tpu.dot_dimension_numbers<[1], [0], [0], [1], [0, 0, 1, 1], [], []>} : vector<16x32xbf16>, vector<32x16xbf16>, vector<16x16xf32> -> vector<16x16xf32>
    %c0_28 = arith.constant 0 : index
    %c0_29 = arith.constant 0 : index
    %37 = vector.load %arg12[%c0_28, %c0_29] : memref<1x16xf32, #tpu.memory_space<vmem>>, vector<1x16xf32>
    %38 = vector.broadcast %37 : vector<1x16xf32> to vector<16x16xf32>
    %39 = arith.addf %36, %38 : vector<16x16xf32>
    %40 = arith.addf %17, %39 : vector<16x16xf32>
    %41 = tpu.concatenate %6, %11, %17, %40 in 1 : vector<16x16xf32>, vector<16x16xf32>, vector<16x16xf32>, vector<16x16xf32> -> vector<16x64xf32>
    %c0_30 = arith.constant 0 : index
    %c0_31 = arith.constant 0 : index
    %42 = vector.load %arg13[%c0_30, %c0_31] : memref<16x64xf32, #tpu.memory_space<vmem>>, vector<16x64xf32>
    tpu.vector_store %arg13[%c0_30, %c0_31], %41 {strides = array<i32>} : memref<16x64xf32, #tpu.memory_space<vmem>>, vector<16x64xf32>,
    return
  }
  func.func @transform_0(%arg0: i32) -> (i32, i32) {
    %c0_i32 = arith.constant 0 : i32
    %c0_i32_0 = arith.constant 0 : i32
    return %arg0, %c0_i32 : i32, i32
  }
  func.func @transform_1(%arg0: i32) -> (i32, i32) {
    %c0_i32 = arith.constant 0 : i32
    %c0_i32_0 = arith.constant 0 : i32
    return %arg0, %c0_i32 : i32, i32
  }
  func.func @transform_2(%arg0: i32) -> (i32, i32) {
    %c0_i32 = arith.constant 0 : i32
    %c0_i32_0 = arith.constant 0 : i32
    %c0_i32_1 = arith.constant 0 : i32
    return %c0_i32, %c0_i32_0 : i32, i32
  }
  func.func @transform_3(%arg0: i32) -> (i32, i32) {
    %c0_i32 = arith.constant 0 : i32
    %c0_i32_0 = arith.constant 0 : i32
    %c0_i32_1 = arith.constant 0 : i32
    return %c0_i32, %c0_i32_0 : i32, i32
  }
  func.func @transform_4(%arg0: i32) -> (i32, i32) {
    %c0_i32 = arith.constant 0 : i32
    %c0_i32_0 = arith.constant 0 : i32
    %c0_i32_1 = arith.constant 0 : i32
    return %c0_i32, %c0_i32_0 : i32, i32
  }
  func.func @transform_5(%arg0: i32) -> (i32, i32) {
    %c0_i32 = arith.constant 0 : i32
    %c0_i32_0 = arith.constant 0 : i32
    %c0_i32_1 = arith.constant 0 : i32
    return %c0_i32, %c0_i32_0 : i32, i32
  }
  func.func @transform_6(%arg0: i32) -> (i32, i32) {
    %c0_i32 = arith.constant 0 : i32
    %c0_i32_0 = arith.constant 0 : i32
    %c0_i32_1 = arith.constant 0 : i32
    return %c0_i32, %c0_i32_0 : i32, i32
  }
  func.func @transform_7(%arg0: i32) -> (i32, i32) {
    %c0_i32 = arith.constant 0 : i32
    %c0_i32_0 = arith.constant 0 : i32
    %c0_i32_1 = arith.constant 0 : i32
    return %c0_i32, %c0_i32_0 : i32, i32
  }
  func.func @transform_8(%arg0: i32) -> (i32, i32) {
    %c0_i32 = arith.constant 0 : i32
    %c0_i32_0 = arith.constant 0 : i32
    %c0_i32_1 = arith.constant 0 : i32
    return %c0_i32, %c0_i32_0 : i32, i32
  }
  func.func @transform_9(%arg0: i32) -> (i32, i32) {
    %c0_i32 = arith.constant 0 : i32
    %c0_i32_0 = arith.constant 0 : i32
    %c0_i32_1 = arith.constant 0 : i32
    return %c0_i32, %c0_i32_0 : i32, i32
  }
  func.func @transform_10(%arg0: i32) -> (i32, i32) {
    %c0_i32 = arith.constant 0 : i32
    %c0_i32_0 = arith.constant 0 : i32
    %c0_i32_1 = arith.constant 0 : i32
    return %c0_i32, %c0_i32_0 : i32, i32
  }
  func.func @transform_11(%arg0: i32) -> (i32, i32) {
    %c0_i32 = arith.constant 0 : i32
    %c0_i32_0 = arith.constant 0 : i32
    %c0_i32_1 = arith.constant 0 : i32
    return %c0_i32, %c0_i32_0 : i32, i32
  }
  func.func @transform_12(%arg0: i32) -> (i32, i32) {
    %c0_i32 = arith.constant 0 : i32
    %c0_i32_0 = arith.constant 0 : i32
    return %arg0, %c0_i32 : i32, i32
  }
}

</mosaic_0001>

<bundles_post_ra>
// kernel: latent_sampling.1
= control target key start
LH: loop header
LB: loop body
LE: loop exit
PB: predicated region body
PF: predicated region fallthrough
CT: control target
= control target key end

     0   :  { %v519_v0 = vmov 0.0   ;;  %vm520_vm0 = vmmov 0   ;;  %vm68_vm1 = vcmask 261120   ;;  %s521_s16 = smov 16   ;;  %s522_s21 = smov 32   ;;  %vm205_vm2 = vcmask 130048   ;;  %s685_s4 = inlined_call_operand.vmem [shape: bf16[32,16], index: 4, kind: input, shape index: {}]   ;;  %s686_s0 = inlined_call_operand.vmem [shape: f32[16,32], index: 0, kind: input, shape index: {}]   ;;  %s687_s2 = inlined_call_operand.vmem [shape: bf16[32,16], index: 2, kind: input, shape index: {}]   ;;  %s688_s6 = inlined_call_operand.vmem [shape: bf16[16,32], index: 6, kind: input, shape index: {}]   ;;  %s689_s5 = inlined_call_operand.vmem [shape: f32[1,16], index: 5, kind: input, shape index: {}]   ;;  %s690_s3 = inlined_call_operand.vmem [shape: f32[1,16], index: 3, kind: input, shape index: {}]   ;;  %s691_s1 = inlined_call_operand.vmem [shape: f32[16,16], index: 1, kind: input, shape index: {}]   ;;  %s692_s8 = inlined_call_operand.vmem [shape: bf16[32,32], index: 8, kind: input, shape index: {}]   ;;  %s693_s7 = inlined_call_operand.vmem [shape: f32[1,32], index: 7, kind: input, shape index: {}]   ;;  %s694_s10 = inlined_call_operand.vmem [shape: bf16[32,16], index: 10, kind: input, shape index: {}]   ;;  %s695_s9 = inlined_call_operand.vmem [shape: f32[1,32], index: 9, kind: input, shape index: {}]   ;;  %s696_s11 = inlined_call_operand.vmem [shape: f32[1,16], index: 11, kind: input, shape index: {}]   ;;  %s697_s12 = inlined_call_operand.vmem [shape: f32[16,64], index: 12, kind: output, shape index: {}]  }
   0x1   :  { %471 = vmatprep.subr.bf16.mxu1 %v519_v0  ;;  %v506_v1 = vld [vmem:[%s685_s4 + $0x8] sm:$0xff]   ;;  %475 = vmatprep.mubr.msk.bf16.mxu1 %vm520_vm0, %v519_v0  ;;  %v507_v2 = vld [vmem:[%s685_s4] sm:$0xff]   ;;  %vm420_vm3 = vcmask 392192   ;;  %vm423_vm4 = vcmask 523264  }
   0x2   :  { %463 = vmatprep.subr.bf16.mxu0 %v519_v0  ;;  %467 = vmatprep.mubr.msk.bf16.mxu0 %vm520_vm0, %v519_v0  ;;  %v42_v3 = vld [vmem:[%s686_s0] sm:$0xff]  ;;  %v43_v4 = vld [vmem:[%s686_s0 + $0x8] sm:$0xff] }
   0x3   :  { %472 = vmatpush3.bf16.msra.mxu1 %v506_v1  ;;  %v508_v5 = vld [vmem:[%s687_s2 + $0x8] sm:$0xff]   ;;  %v44_v6 = vpack.c.bf16 %v43_v4, %v42_v3  ;;  %v509_v7 = vld [vmem:[%s687_s2] sm:$0xff]  }
   0x4   :  { %473 = vmatprep.subr.bf16.mxu1 %v519_v0  ;;  %464 = vmatpush3.bf16.msra.mxu0 %v508_v5  ;;  %v510_v8 = vld [vmem:[%s688_s6] sm:$0xff]   ;;  %v184_v29 = vld [vmem:[%s691_s1 + $0x8] sm:$0xff] }
   0x5   :  { %465 = vmatprep.subr.bf16.mxu0 %v519_v0  ;;  %v434_v9 = vld [vmem:[%s689_s5] ss:$0 sm:$0xff]  ;;  %v511_v36 = vld [vmem:[%s692_s8 + $0x8] sm:$0xff]  }
   0x6   :  { %v430_v24 = vld [vmem:[%s690_s3] ss:$0 sm:$0xff]  ;;  %v513_v48 = vld [vmem:[%s694_s10 + $0x8] sm:$0xff]  }
   0x7   :  { %474 = vmatpush3.bf16.msra.mxu1 %v507_v2  ;;  %v183_v25 = vld [vmem:[%s691_s1] sm:$0xff] }
   0x8   :  { %485 = vmatprep.subr.bf16.mxu1 %v519_v0  ;;  %466 = vmatpush3.bf16.msra.mxu0 %v509_v7  ;;  %v512_v37 = vld [vmem:[%s692_s8] sm:$0xff]  }
   0x9   :  { %479 = vmatprep.subr.bf16.mxu0 %v519_v0  ;;  %v438_v38 = vld [vmem:[%s693_s7] ss:$0 sm:$0xff] }
   0xa   :  { %476 = vmatmul.mubr.msk.bf16.vlgmr.msra.gmra.mxu1 %vm68_vm1, %v44_v6  ;;  %v514_v49 = vld [vmem:[%s694_s10] sm:$0xff]  }
   0xb   :  { %489 = vmatprep.mubr.msk.bf16.mxu1 %vm520_vm0, %v519_v0  ;;  %468 = vmatmul.mubr.msk.bf16.vlgmr.msra.gmra.mxu0 %vm68_vm1, %v44_v6  ;;  %v441_v50 = vld [vmem:[%s695_s9] ss:$0 sm:$0xff]  ;;  %s523_s9 = smov 48  }
   0xc   :  { %481 = vmatprep.mubr.msk.bf16.mxu0 %vm520_vm0, %v519_v0  ;;  %480 = vmatpush3.bf16.msra.mxu0 %v510_v8  ;;  %v445_v60 = vld [vmem:[%s696_s11] ss:$0 sm:$0xff] }
   0xd   :  { %493 = vmatprep.subr.bf16.mxu0 %v519_v0  ;;  %486 = vmatpush3.bf16.msra.mxu1 %v511_v36 }
   0xe   :  { %487 = vmatprep.subr.bf16.mxu1 %v519_v0 }
  0x11   :  { %488 = vmatpush3.bf16.msra.mxu1 %v512_v37 }
  0xca   :  { %v170_v10 = vpop.f32.mrf.mxu1 }
  0xcb   :  { %v171_v11 = vadd.f32 %v434_v9, %v170_v10  ;;  %v106_v14 = vpop.f32.mrf.mxu0 }
  0xcc   :  { %v477_v12 = vpop.f32.mrf.mxu1  ;;  %v636_v26 = vadd.f32 %v430_v24, %v106_v14 }
  0xcd   :  { %v177_v13 = vmul.f32 0.5, %v171_v11  ;;  %394 = vrot.lane.b32.xlu0 %v171_v11, %s521_s16  ;;  %v469_v18 = vpop.f32.mrf.mxu0 }
  0xce   :  { %v173_v15 = vpop.f32.mrf.mxu1 }
  0xcf   :  { %v179_v16 = vmul.f32 1.442695, %v177_v13  ;;  %v174_v17 = vadd.f32 %v434_v9, %v173_v15  ;;  %v109_v21 = vpop.f32.mrf.mxu0 }
  0xd0   :  { %v478_v19 = vpop.f32.mrf.mxu1  ;;  %v642_v32 = vadd.f32 %v430_v24, %v109_v21 }
  0xd1   :  { %515 = vpow2.f32 %v179_v16  ;;  %v178_v20 = vmul.f32 0.5, %v174_v17  ;;  %396 = vrot.lane.b32.xlu0 %v174_v17, %s521_s16  ;;  %v470_v23 = vpop.f32.mrf.mxu0 }
  0xd3   :  { %v181_v22 = vmul.f32 1.442695, %v178_v20 }
  0xd5   :  { %517 = vpow2.f32 %v181_v22 }
  0xde   :  { %v516_v27 = vpop.eup %515 }
  0xdf   :  { %v185_v28 = vmul.f32 %v516_v27, %v183_v25 }
  0xe1   :  { %v187_v30 = vadd.f32 %v185_v28, %v636_v26 }
  0xe2   :  { %v518_v31 = vpop.eup %517 }
  0xe3   :  { %v186_v33 = vmul.f32 %v518_v31, %v184_v29  ;;  %402 = vrot.lane.b32.xlu1 %v187_v30, %s522_s21 }
  0xe5   :  { %v188_v34 = vadd.f32 %v186_v33, %v642_v32 }
  0xe7   :  { %v189_v35 = vpack.c.bf16 %v188_v34, %v187_v30  ;;  %404 = vrot.lane.b32.xlu1 %v188_v34, %s522_s21 }
  0xe9   :  { %482 = vmatmul.mubr.msk.bf16.vlgmr.msra.gmra.mxu0 %vm205_vm2, %v189_v35 }
  0xea   :  { %497 = vmatprep.mubr.msk.bf16.mxu0 %vm520_vm0, %v519_v0  ;;  %494 = vmatpush3.bf16.msra.mxu0 %v513_v48 }
  0xeb   :  { %495 = vmatprep.subr.bf16.mxu0 %v519_v0 }
  0xee   :  { %496 = vmatpush3.bf16.msra.mxu0 %v514_v49 }
 0x13f   :  { %v395_v5 = vpop.permute.xlu0 %394 }
 0x140   :  { %v416_v8 = vsel %vm205_vm2, %v636_v26, %v395_v5 }
 0x143   :  { %v397_v7 = vpop.permute.xlu0 %396 }
 0x144   :  { %v417_v13 = vsel %vm205_vm2, %v642_v32, %v397_v7 }
 0x155   :  { %v403_v6 = vpop.permute.xlu1 %402 }
 0x156   :  { %v418_v9 = vsel %vm68_vm1, %v416_v8, %v403_v6 }
 0x159   :  { %v405_v10 = vpop.permute.xlu1 %404 }
 0x15a   :  { %v419_v14 = vsel %vm68_vm1, %v417_v13, %v405_v10 }
 0x1a9   :  { %v243_v39 = vpop.f32.mrf.mxu0 }
 0x1aa   :  { %v244_v41 = vadd.f32 %v438_v38, %v243_v39 }
 0x1ab   :  { %v483_v40 = vpop.f32.mrf.mxu0 }
 0x1ac   :  { %v250_v45 = vmax.f32 %v244_v41, 0.0 }
 0x1ad   :  { %v246_v42 = vpop.f32.mrf.mxu0 }
 0x1ae   :  { %v247_v43 = vadd.f32 %v438_v38, %v246_v42 }
 0x1af   :  { %v484_v44 = vpop.f32.mrf.mxu0 }
 0x1b0   :  { %v251_v46 = vmax.f32 %v247_v43, 0.0 }
 0x1b2   :  { %v252_v47 = vpack.c.bf16 %v251_v46, %v250_v45 }
 0x1b4   :  { %490 = vmatmul.mubr.msk.bf16.vlgmr.msra.gmra.mxu1 %vm68_vm1, %v252_v47 }
 0x274   :  { %v313_v51 = vpop.f32.mrf.mxu1 }
 0x275   :  { %v314_v53 = vadd.f32 %v441_v50, %v313_v51 }
 0x276   :  { %v491_v52 = vpop.f32.mrf.mxu1 }
 0x277   :  { %v320_v57 = vmax.f32 %v314_v53, 0.0 }
 0x278   :  { %v316_v54 = vpop.f32.mrf.mxu1 }
 0x279   :  { %v317_v55 = vadd.f32 %v441_v50, %v316_v54 }
 0x27a   :  { %v492_v56 = vpop.f32.mrf.mxu1 }
 0x27b   :  { %v321_v58 = vmax.f32 %v317_v55, 0.0 }
 0x27d   :  { %v322_v59 = vpack.c.bf16 %v321_v58, %v320_v57 }
 0x27f   :  { %498 = vmatmul.mubr.msk.bf16.vlgmr.msra.gmra.mxu0 %vm68_vm1, %v322_v59 }
 0x33f   :  { %v383_v61 = vpop.f32.mrf.mxu0 }
 0x340   :  { %v384_v62 = vadd.f32 %v445_v60, %v383_v61 }
 0x341   :  { %v499_v63 = vpop.f32.mrf.mxu0 }
 0x342   :  { %v390_v0 = vadd.f32 %v384_v62, %v187_v30 }
 0x343   :  { %v386_v1 = vpop.f32.mrf.mxu0 }
 0x344   :  { %v387_v2 = vadd.f32 %v445_v60, %v386_v1  ;;  %410 = vrot.lane.b32.xlu0 %v390_v0, %s523_s9 }
 0x345   :  { %v500_v3 = vpop.f32.mrf.mxu0 }
 0x346   :  { %v391_v4 = vadd.f32 %v387_v2, %v188_v34 }
 0x348   :  { %412 = vrot.lane.b32.xlu1 %v391_v4, %s523_s9 }
 0x3b6   :  { %v411_v11 = vpop.permute.xlu0 %410 }
 0x3b7   :  { %v421_v12 = vsel %vm420_vm3, %v418_v9, %v411_v11 }
 0x3b8   :  { %424 = vst.msk [vmem:[%s697_s12] sm:$0xff] %vm423_vm4, %v421_v12 }
 0x3ba   :  { %v413_v15 = vpop.permute.xlu1 %412 }
 0x3bb   :  { %v422_v16 = vsel %vm420_vm3, %v419_v14, %v413_v15 }
 0x3bc   :  { %425 = vst.msk [vmem:[%s697_s12 + $0x8] sm:$0xff] %vm423_vm4, %v422_v16 }

</bundles_post_ra>
